<compile_context>
chip_gen: v7x
topology: tpu7x:2x2x1
jax: 0.10.0
libtpu: 0.0.40
codegen_flags: <defaults>
</compile_context>

<pallas_src>
import functools

import jax
import jax.numpy as jnp
from jax import lax
from jax.experimental import pallas as pl
from jax.experimental.pallas import tpu as pltpu

_BN_EPS = 1e-5


def _round_up(x, m):
    return (x + m - 1) // m * m


def _default_vmem_limit():
    # v5e/v6e have 128 MiB physical VMEM, v7x only 64 MiB: derive the scoped
    # limit from the chip instead of hard-coding, with a safe fallback.
    try:
        cap = pltpu.get_tpu_info().vmem_capacity_bytes
        return min(int(cap * 0.45), 64 * 1024 * 1024)
    except Exception:
        return 32 * 1024 * 1024


_VMEM_LIMIT_BYTES = _default_vmem_limit()


@functools.partial(jax.jit, static_argnames=("stride", "padding"))
def conv_cell_forward(x, weight, bias, gamma, beta, *, stride=1, padding=1):
    """x: (N, C, H, W) f32. weight: (OC, C, KH, KW). Returns (N, OC, OH, OW) f32."""
    N, C, H, W = x.shape
    OC, _, KH, KW = weight.shape

    H_pad, W_pad = H + 2 * padding, W + 2 * padding
    OH1, OW1 = H_pad - KH + 1, W_pad - KW + 1          # stride-1 output extent
    OH = (H + 2 * padding - KH) // stride + 1
    OW = (W + 2 * padding - KW) // stride + 1
    LW = OH1 * W_pad                                   # "wide" columns per image
    XLEN = _round_up(H_pad * W_pad + KW - 1, 128)      # flat slab len (+wraparound slack)

    # ---- operands (no im2col, no layout transposes in HBM) -------------------
    xp = jnp.pad(x.astype(jnp.float32),
                 ((0, 0), (0, 0), (padding, padding), (padding, padding)))
    x_flat = xp.reshape(N, C, H_pad * W_pad)
    x_flat = jnp.pad(x_flat, ((0, 0), (0, 0), (0, XLEN - H_pad * W_pad)))
    x_flat = x_flat.astype(jnp.bfloat16)               # bf16 MXU operand (f32 accum below)

    # w_stack[kh*KW+kw, oc, c] == weight[oc, c, kh, kw]
    w_stack = jnp.transpose(weight.astype(jnp.float32), (2, 3, 0, 1))
    w_stack = w_stack.reshape(KH * KW, OC, C).astype(jnp.bfloat16)
    b2 = bias.astype(jnp.float32).reshape(OC, 1)

    # valid-column mask in the wide geometry (last KW-1 cols of each row = garbage)
    col = jnp.arange(LW, dtype=jnp.int32) % W_pad
    vmask = (col < OW1).astype(jnp.float32).reshape(1, LW)

    inv_cnt = 1.0 / float(OH1 * OW1)

    # ---- pass 1: implicit-GEMM conv + bias + per-image BN partial stats ------
    def conv_stats_kernel(x_ref, w_ref, b_ref, m_ref, y_ref, st_ref):
        acc = jnp.zeros((OC, LW), jnp.float32)
        for kh in range(KH):                       # static 3x3 tap loop
            for kw in range(KW):
                off = kh * W_pad + kw
                sl = x_ref[0, :, off:off + LW]     # (C, LW) bf16, contiguous lanes
                acc = acc + lax.dot(w_ref[kh * KW + kw], sl,
                                    preferred_element_type=jnp.float32)
        y = acc + b_ref[...]                       # conv bias, (OC, LW) f32
        y_ref[0] = y
        # Welford-style per-image partials; garbage columns masked out.
        m = m_ref[...]                             # (1, LW)
        mean_t = jnp.sum(y * m, axis=1, keepdims=True) * inv_cnt       # (OC, 1)
        d = y - mean_t
        ssd_t = jnp.sum(d * d * m, axis=1, keepdims=True)              # (OC, 1)
        st_ref[0, :, 0:1] = mean_t
        st_ref[0, :, 1:2] = ssd_t

    y_wide, part = pl.pallas_call(
        conv_stats_kernel,
        out_shape=(jax.ShapeDtypeStruct((N, OC, LW), jnp.float32),
                   jax.ShapeDtypeStruct((N, OC, 2), jnp.float32)),
        grid=(N,),
        in_specs=[
            pl.BlockSpec((1, C, XLEN), lambda n: (n, 0, 0)),      # one padded image
            pl.BlockSpec((KH * KW, OC, C), lambda n: (0, 0, 0)),  # resident weights
            pl.BlockSpec((OC, 1), lambda n: (0, 0)),
            pl.BlockSpec((1, LW), lambda n: (0, 0)),
        ],
        out_specs=(
            pl.BlockSpec((1, OC, LW), lambda n: (n, 0, 0)),
            pl.BlockSpec((1, OC, 2), lambda n: (n, 0, 0)),
        ),
        compiler_params=pltpu.CompilerParams(
            dimension_semantics=("parallel",),
            vmem_limit_bytes=_VMEM_LIMIT_BYTES),
    )(x_flat, w_stack, b2, vmask)

    if stride != 1:
        # TODO(synk): dedicated strided implicit-GEMM kernel; for now the conv is
        # still the Pallas kernel above, then subsample + BN/ReLU as fused XLA ops.
        y4 = y_wide.reshape(N, OC, OH1, W_pad)[:, :, :, :OW1]
        y_s = y4[:, :, ::stride, ::stride][:, :, :OH, :OW]
        mu = jnp.mean(y_s, axis=(0, 2, 3), keepdims=True)
        va = jnp.mean(jnp.square(y_s - mu), axis=(0, 2, 3), keepdims=True)
        y_s = (y_s - mu) * lax.rsqrt(va + _BN_EPS)
        y_s = y_s * gamma.reshape(1, OC, 1, 1) + beta.reshape(1, OC, 1, 1)
        return jnp.maximum(y_s, 0.0)

    # ---- tiny (OC,) glue: combine per-image stats (Chan), build scale/shift --
    cnt = float(OH1 * OW1)
    Mtot = float(N) * cnt
    mean_t = part[:, :, 0]                                   # (N, OC)
    ssd_t = part[:, :, 1]                                    # (N, OC)
    mean = jnp.sum(mean_t, axis=0) * (cnt / Mtot)            # (OC,)
    m2 = jnp.sum(ssd_t, axis=0) + cnt * jnp.sum((mean_t - mean[None, :]) ** 2, axis=0)
    var = jnp.maximum(m2 / Mtot, 0.0)                        # biased var (BN train mode)
    inv = lax.rsqrt(var + _BN_EPS)
    g32 = gamma.astype(jnp.float32)
    scale = (g32 * inv).reshape(OC, 1)
    shift = (beta.astype(jnp.float32) - mean * g32 * inv).reshape(OC, 1)

    # ---- pass 2: fused scale/shift + ReLU, compact away the garbage columns --
    def bn_relu_pack_kernel(y_ref, sc_ref, sh_ref, o_ref):
        yn = jnp.maximum(y_ref[0] * sc_ref[...] + sh_ref[...], 0.0)   # (OC, LW), lane-dense
        for r in range(OH1):                                          # drop KW-1 cols per row
            o_ref[0, :, r * OW1:(r + 1) * OW1] = yn[:, r * W_pad:r * W_pad + OW1]

    out_flat = pl.pallas_call(
        bn_relu_pack_kernel,
        out_shape=jax.ShapeDtypeStruct((N, OC, OH1 * OW1), jnp.float32),
        grid=(N,),
        in_specs=[
            pl.BlockSpec((1, OC, LW), lambda n: (n, 0, 0)),
            pl.BlockSpec((OC, 1), lambda n: (0, 0)),
            pl.BlockSpec((OC, 1), lambda n: (0, 0)),
        ],
        out_specs=pl.BlockSpec((1, OC, OH1 * OW1), lambda n: (n, 0, 0)),
        compiler_params=pltpu.CompilerParams(
            dimension_semantics=("parallel",),
            vmem_limit_bytes=_VMEM_LIMIT_BYTES),
    )(y_wide, scale, shift)

    # Output is already channel-major: reshape is free (no transpose round trip).
    return out_flat.reshape(N, OC, OH1, OW1)


def _reference(x, weight, bias, gamma, beta, *, stride=1, padding=1):
    y = lax.conv_general_dilated(
        x, weight, window_strides=(stride, stride),
        padding=[(padding, padding), (padding, padding)],
        dimension_numbers=("NCHW", "OIHW", "NCHW"))
    y = y + bias.reshape(1, -1, 1, 1)
    mean = jnp.mean(y, axis=(0, 2, 3), keepdims=True)
    var = jnp.mean((y - mean) ** 2, axis=(0, 2, 3), keepdims=True)
    y = (y - mean) * lax.rsqrt(var + _BN_EPS)
    y = y * gamma.reshape(1, -1, 1, 1) + beta.reshape(1, -1, 1, 1)
    return jnp.maximum(y, 0.0)


if __name__ == "__main__":
    # conv_cell(in_channels=4, out_channels=8, kernel_size=3, stride=1, padding=1,
    #           bias=True, is_BN=True, is_avtivate=True)
    N, C, H, W = 2, 4, 16, 16
    OC, KH, KW = 8, 3, 3
    stride, padding = 1, 1

    key = jax.random.PRNGKey(0)
    kx, kw_, kb, kg, kbe = jax.random.split(key, 5)
    x = jax.random.normal(kx, (N, C, H, W), dtype=jnp.float32)
    weight = 0.1 * jax.random.normal(kw_, (OC, C, KH, KW), dtype=jnp.float32)
    bias = 0.1 * jax.random.normal(kb, (OC,), dtype=jnp.float32)
    gamma = 1.0 + 0.1 * jax.random.normal(kg, (OC,), dtype=jnp.float32)
    beta = 0.1 * jax.random.normal(kbe, (OC,), dtype=jnp.float32)

    y = conv_cell_forward(x, weight, bias, gamma, beta, stride=stride, padding=padding)
    y = jax.block_until_ready(y)

    y_ref = _reference(x, weight, bias, gamma, beta, stride=stride, padding=padding)
    assert y.shape == (N, OC, H, W)
    # bf16 MXU operands (f32 accumulation / f32 BN stats) -> looser tolerance than pure f32.
    assert jnp.allclose(y, y_ref, atol=5e-2, rtol=5e-2), "mismatch vs JAX reference"

    print("KERNEL_OK")
</pallas_src>

<mosaic_0001>
module attributes {stable_mosaic.version = 11 : i64} {
  func.func @conv_stats_kernel(%arg0: i32, %arg1: memref<1x4x384xbf16, #tpu.memory_space<vmem>>, %arg2: memref<9x8x4xbf16, #tpu.memory_space<vmem>>, %arg3: memref<8x1xf32, #tpu.memory_space<vmem>>, %arg4: memref<1x288xf32, #tpu.memory_space<vmem>>, %arg5: memref<1x8x288xf32, #tpu.memory_space<vmem>>, %arg6: memref<1x8x2xf32, #tpu.memory_space<vmem>>) attributes {dimension_semantics = [#tpu.dimension_semantics<parallel>], iteration_bounds = array<i64: 2>, scalar_prefetch = 0 : i64, scratch_operands = 0 : i64, tpu.core_type = #tpu.core_type<tc>, window_params = [{transform_indices = @transform_0, window_bounds = array<i64: 1, 4, 384>}, {pipeline_mode = #tpu.pipeline_mode<synchronous>, transform_indices = @transform_1, window_bounds = array<i64: 9, 8, 4>}, {pipeline_mode = #tpu.pipeline_mode<synchronous>, transform_indices = @transform_2, window_bounds = array<i64: 8, 1>}, {pipeline_mode = #tpu.pipeline_mode<synchronous>, transform_indices = @transform_3, window_bounds = array<i64: 1, 288>}, {transform_indices = @transform_4, window_bounds = array<i64: 1, 8, 288>}, {transform_indices = @transform_5, window_bounds = array<i64: 1, 8, 2>}]} {
    %cst = arith.constant 0.000000e+00 : f32
    %0 = vector.broadcast %cst : f32 to vector<8x288xf32>
    %c0 = arith.constant 0 : index
    %c0_0 = arith.constant 0 : index
    %c0_1 = arith.constant 0 : index
    %1 = vector.load %arg1[%c0, %c0_0, %c0_1] : memref<1x4x384xbf16, #tpu.memory_space<vmem>>, vector<1x4x288xbf16>
    %2 = vector.shape_cast %1 : vector<1x4x288xbf16> to vector<4x288xbf16>
    %c0_2 = arith.constant 0 : index
    %c0_3 = arith.constant 0 : index
    %c0_4 = arith.constant 0 : index
    %3 = vector.load %arg2[%c0_2, %c0_3, %c0_4] : memref<9x8x4xbf16, #tpu.memory_space<vmem>>, vector<1x8x4xbf16>
    %4 = vector.shape_cast %3 : vector<1x8x4xbf16> to vector<8x4xbf16>
    %cst_5 = arith.constant dense<0.000000e+00> : vector<8x288xf32>
    %5 = tpu.matmul %4, %2, %cst_5 {dimension_numbers = #tpu.dot_dimension_numbers<[1], [0], [0], [1], [0, 0, 1, 1], [], []>} : vector<8x4xbf16>, vector<4x288xbf16>, vector<8x288xf32> -> vector<8x288xf32>
    %6 = arith.addf %0, %5 : vector<8x288xf32>
    %c0_6 = arith.constant 0 : index
    %c0_7 = arith.constant 0 : index
    %c1 = arith.constant 1 : index
    %7 = vector.load %arg1[%c0_6, %c0_7, %c1] : memref<1x4x384xbf16, #tpu.memory_space<vmem>>, vector<1x4x288xbf16>
    %8 = vector.shape_cast %7 : vector<1x4x288xbf16> to vector<4x288xbf16>
    %c1_8 = arith.constant 1 : index
    %c0_9 = arith.constant 0 : index
    %c0_10 = arith.constant 0 : index
    %9 = vector.load %arg2[%c1_8, %c0_9, %c0_10] : memref<9x8x4xbf16, #tpu.memory_space<vmem>>, vector<1x8x4xbf16>
    %10 = vector.shape_cast %9 : vector<1x8x4xbf16> to vector<8x4xbf16>
    %cst_11 = arith.constant dense<0.000000e+00> : vector<8x288xf32>
    %11 = tpu.matmul %10, %8, %cst_11 {dimension_numbers = #tpu.dot_dimension_numbers<[1], [0], [0], [1], [0, 0, 1, 1], [], []>} : vector<8x4xbf16>, vector<4x288xbf16>, vector<8x288xf32> -> vector<8x288xf32>
    %12 = arith.addf %6, %11 : vector<8x288xf32>
    %c0_12 = arith.constant 0 : index
    %c0_13 = arith.constant 0 : index
    %c2 = arith.constant 2 : index
    %13 = vector.load %arg1[%c0_12, %c0_13, %c2] : memref<1x4x384xbf16, #tpu.memory_space<vmem>>, vector<1x4x288xbf16>
    %14 = vector.shape_cast %13 : vector<1x4x288xbf16> to vector<4x288xbf16>
    %c2_14 = arith.constant 2 : index
    %c0_15 = arith.constant 0 : index
    %c0_16 = arith.constant 0 : index
    %15 = vector.load %arg2[%c2_14, %c0_15, %c0_16] : memref<9x8x4xbf16, #tpu.memory_space<vmem>>, vector<1x8x4xbf16>
    %16 = vector.shape_cast %15 : vector<1x8x4xbf16> to vector<8x4xbf16>
    %cst_17 = arith.constant dense<0.000000e+00> : vector<8x288xf32>
    %17 = tpu.matmul %16, %14, %cst_17 {dimension_numbers = #tpu.dot_dimension_numbers<[1], [0], [0], [1], [0, 0, 1, 1], [], []>} : vector<8x4xbf16>, vector<4x288xbf16>, vector<8x288xf32> -> vector<8x288xf32>
    %18 = arith.addf %12, %17 : vector<8x288xf32>
    %c0_18 = arith.constant 0 : index
    %c0_19 = arith.constant 0 : index
    %c18 = arith.constant 18 : index
    %19 = vector.load %arg1[%c0_18, %c0_19, %c18] : memref<1x4x384xbf16, #tpu.memory_space<vmem>>, vector<1x4x288xbf16>
    %20 = vector.shape_cast %19 : vector<1x4x288xbf16> to vector<4x288xbf16>
    %c3 = arith.constant 3 : index
    %c0_20 = arith.constant 0 : index
    %c0_21 = arith.constant 0 : index
    %21 = vector.load %arg2[%c3, %c0_20, %c0_21] : memref<9x8x4xbf16, #tpu.memory_space<vmem>>, vector<1x8x4xbf16>
    %22 = vector.shape_cast %21 : vector<1x8x4xbf16> to vector<8x4xbf16>
    %cst_22 = arith.constant dense<0.000000e+00> : vector<8x288xf32>
    %23 = tpu.matmul %22, %20, %cst_22 {dimension_numbers = #tpu.dot_dimension_numbers<[1], [0], [0], [1], [0, 0, 1, 1], [], []>} : vector<8x4xbf16>, vector<4x288xbf16>, vector<8x288xf32> -> vector<8x288xf32>
    %24 = arith.addf %18, %23 : vector<8x288xf32>
    %c0_23 = arith.constant 0 : index
    %c0_24 = arith.constant 0 : index
    %c19 = arith.constant 19 : index
    %25 = vector.load %arg1[%c0_23, %c0_24, %c19] : memref<1x4x384xbf16, #tpu.memory_space<vmem>>, vector<1x4x288xbf16>
    %26 = vector.shape_cast %25 : vector<1x4x288xbf16> to vector<4x288xbf16>
    %c4 = arith.constant 4 : index
    %c0_25 = arith.constant 0 : index
    %c0_26 = arith.constant 0 : index
    %27 = vector.load %arg2[%c4, %c0_25, %c0_26] : memref<9x8x4xbf16, #tpu.memory_space<vmem>>, vector<1x8x4xbf16>
    %28 = vector.shape_cast %27 : vector<1x8x4xbf16> to vector<8x4xbf16>
    %cst_27 = arith.constant dense<0.000000e+00> : vector<8x288xf32>
    %29 = tpu.matmul %28, %26, %cst_27 {dimension_numbers = #tpu.dot_dimension_numbers<[1], [0], [0], [1], [0, 0, 1, 1], [], []>} : vector<8x4xbf16>, vector<4x288xbf16>, vector<8x288xf32> -> vector<8x288xf32>
    %30 = arith.addf %24, %29 : vector<8x288xf32>
    %c0_28 = arith.constant 0 : index
    %c0_29 = arith.constant 0 : index
    %c20 = arith.constant 20 : index
    %31 = vector.load %arg1[%c0_28, %c0_29, %c20] : memref<1x4x384xbf16, #tpu.memory_space<vmem>>, vector<1x4x288xbf16>
    %32 = vector.shape_cast %31 : vector<1x4x288xbf16> to vector<4x288xbf16>
    %c5 = arith.constant 5 : index
    %c0_30 = arith.constant 0 : index
    %c0_31 = arith.constant 0 : index
    %33 = vector.load %arg2[%c5, %c0_30, %c0_31] : memref<9x8x4xbf16, #tpu.memory_space<vmem>>, vector<1x8x4xbf16>
    %34 = vector.shape_cast %33 : vector<1x8x4xbf16> to vector<8x4xbf16>
    %cst_32 = arith.constant dense<0.000000e+00> : vector<8x288xf32>
    %35 = tpu.matmul %34, %32, %cst_32 {dimension_numbers = #tpu.dot_dimension_numbers<[1], [0], [0], [1], [0, 0, 1, 1], [], []>} : vector<8x4xbf16>, vector<4x288xbf16>, vector<8x288xf32> -> vector<8x288xf32>
    %36 = arith.addf %30, %35 : vector<8x288xf32>
    %c0_33 = arith.constant 0 : index
    %c0_34 = arith.constant 0 : index
    %c36 = arith.constant 36 : index
    %37 = vector.load %arg1[%c0_33, %c0_34, %c36] : memref<1x4x384xbf16, #tpu.memory_space<vmem>>, vector<1x4x288xbf16>
    %38 = vector.shape_cast %37 : vector<1x4x288xbf16> to vector<4x288xbf16>
    %c6 = arith.constant 6 : index
    %c0_35 = arith.constant 0 : index
    %c0_36 = arith.constant 0 : index
    %39 = vector.load %arg2[%c6, %c0_35, %c0_36] : memref<9x8x4xbf16, #tpu.memory_space<vmem>>, vector<1x8x4xbf16>
    %40 = vector.shape_cast %39 : vector<1x8x4xbf16> to vector<8x4xbf16>
    %cst_37 = arith.constant dense<0.000000e+00> : vector<8x288xf32>
    %41 = tpu.matmul %40, %38, %cst_37 {dimension_numbers = #tpu.dot_dimension_numbers<[1], [0], [0], [1], [0, 0, 1, 1], [], []>} : vector<8x4xbf16>, vector<4x288xbf16>, vector<8x288xf32> -> vector<8x288xf32>
    %42 = arith.addf %36, %41 : vector<8x288xf32>
    %c0_38 = arith.constant 0 : index
    %c0_39 = arith.constant 0 : index
    %c37 = arith.constant 37 : index
    %43 = vector.load %arg1[%c0_38, %c0_39, %c37] : memref<1x4x384xbf16, #tpu.memory_space<vmem>>, vector<1x4x288xbf16>
    %44 = vector.shape_cast %43 : vector<1x4x288xbf16> to vector<4x288xbf16>
    %c7 = arith.constant 7 : index
    %c0_40 = arith.constant 0 : index
    %c0_41 = arith.constant 0 : index
    %45 = vector.load %arg2[%c7, %c0_40, %c0_41] : memref<9x8x4xbf16, #tpu.memory_space<vmem>>, vector<1x8x4xbf16>
    %46 = vector.shape_cast %45 : vector<1x8x4xbf16> to vector<8x4xbf16>
    %cst_42 = arith.constant dense<0.000000e+00> : vector<8x288xf32>
    %47 = tpu.matmul %46, %44, %cst_42 {dimension_numbers = #tpu.dot_dimension_numbers<[1], [0], [0], [1], [0, 0, 1, 1], [], []>} : vector<8x4xbf16>, vector<4x288xbf16>, vector<8x288xf32> -> vector<8x288xf32>
    %48 = arith.addf %42, %47 : vector<8x288xf32>
    %c0_43 = arith.constant 0 : index
    %c0_44 = arith.constant 0 : index
    %c38 = arith.constant 38 : index
    %49 = vector.load %arg1[%c0_43, %c0_44, %c38] : memref<1x4x384xbf16, #tpu.memory_space<vmem>>, vector<1x4x288xbf16>
    %50 = vector.shape_cast %49 : vector<1x4x288xbf16> to vector<4x288xbf16>
    %c8 = arith.constant 8 : index
    %c0_45 = arith.constant 0 : index
    %c0_46 = arith.constant 0 : index
    %51 = vector.load %arg2[%c8, %c0_45, %c0_46] : memref<9x8x4xbf16, #tpu.memory_space<vmem>>, vector<1x8x4xbf16>
    %52 = vector.shape_cast %51 : vector<1x8x4xbf16> to vector<8x4xbf16>
    %cst_47 = arith.constant dense<0.000000e+00> : vector<8x288xf32>
    %53 = tpu.matmul %52, %50, %cst_47 {dimension_numbers = #tpu.dot_dimension_numbers<[1], [0], [0], [1], [0, 0, 1, 1], [], []>} : vector<8x4xbf16>, vector<4x288xbf16>, vector<8x288xf32> -> vector<8x288xf32>
    %54 = arith.addf %48, %53 : vector<8x288xf32>
    %c0_48 = arith.constant 0 : index
    %c0_49 = arith.constant 0 : index
    %55 = vector.load %arg3[%c0_48, %c0_49] : memref<8x1xf32, #tpu.memory_space<vmem>>, vector<8x1xf32>
    %56 = vector.broadcast %55 : vector<8x1xf32> to vector<8x288xf32>
    %57 = arith.addf %54, %56 : vector<8x288xf32>
    %c0_50 = arith.constant 0 : index
    %c0_51 = arith.constant 0 : index
    %c0_52 = arith.constant 0 : index
    %58 = vector.load %arg5[%c0_50, %c0_51, %c0_52] : memref<1x8x288xf32, #tpu.memory_space<vmem>>, vector<1x8x288xf32>
    %59 = vector.shape_cast %58 : vector<1x8x288xf32> to vector<8x288xf32>
    %60 = vector.shape_cast %57 : vector<8x288xf32> to vector<1x8x288xf32>
    tpu.vector_store %arg5[%c0_50, %c0_51, %c0_52], %60 {strides = array<i32>} : memref<1x8x288xf32, #tpu.memory_space<vmem>>, vector<1x8x288xf32>,
    %c0_53 = arith.constant 0 : index
    %c0_54 = arith.constant 0 : index
    %61 = vector.load %arg4[%c0_53, %c0_54] : memref<1x288xf32, #tpu.memory_space<vmem>>, vector<1x288xf32>
    %62 = vector.broadcast %61 : vector<1x288xf32> to vector<8x288xf32>
    %63 = arith.mulf %57, %62 : vector<8x288xf32>
    %cst_55 = arith.constant dense<0.000000e+00> : vector<8xf32>
    %64 = vector.multi_reduction <add>, %63, %cst_55 [1] : vector<8x288xf32> to vector<8xf32>
    %65 = vector.shape_cast %64 : vector<8xf32> to vector<8x1xf32>
    %cst_56 = arith.constant 3.906250e-03 : f32
    %66 = vector.broadcast %cst_56 : f32 to vector<8x1xf32>
    %67 = arith.mulf %65, %66 : vector<8x1xf32>
    %68 = vector.broadcast %67 : vector<8x1xf32> to vector<8x288xf32>
    %69 = arith.subf %57, %68 : vector<8x288xf32>
    %70 = arith.mulf %69, %69 : vector<8x288xf32>
    %71 = vector.broadcast %61 : vector<1x288xf32> to vector<8x288xf32>
    %72 = arith.mulf %70, %71 : vector<8x288xf32>
    %cst_57 = arith.constant dense<0.000000e+00> : vector<8xf32>
    %73 = vector.multi_reduction <add>, %72, %cst_57 [1] : vector<8x288xf32> to vector<8xf32>
    %74 = vector.shape_cast %73 : vector<8xf32> to vector<8x1xf32>
    %c0_58 = arith.constant 0 : index
    %c0_59 = arith.constant 0 : index
    %c0_60 = arith.constant 0 : index
    %75 = vector.load %arg6[%c0_58, %c0_59, %c0_60] : memref<1x8x2xf32, #tpu.memory_space<vmem>>, vector<1x8x1xf32>
    %76 = vector.shape_cast %75 : vector<1x8x1xf32> to vector<8x1xf32>
    %77 = vector.shape_cast %67 : vector<8x1xf32> to vector<1x8x1xf32>
    tpu.vector_store %arg6[%c0_58, %c0_59, %c0_60], %77 {strides = array<i32>} : memref<1x8x2xf32, #tpu.memory_space<vmem>>, vector<1x8x1xf32>,
    %c0_61 = arith.constant 0 : index
    %c0_62 = arith.constant 0 : index
    %c1_63 = arith.constant 1 : index
    %78 = vector.load %arg6[%c0_61, %c0_62, %c1_63] : memref<1x8x2xf32, #tpu.memory_space<vmem>>, vector<1x8x1xf32>
    %79 = vector.shape_cast %78 : vector<1x8x1xf32> to vector<8x1xf32>
    %80 = vector.shape_cast %74 : vector<8x1xf32> to vector<1x8x1xf32>
    tpu.vector_store %arg6[%c0_61, %c0_62, %c1_63], %80 {strides = array<i32>} : memref<1x8x2xf32, #tpu.memory_space<vmem>>, vector<1x8x1xf32>,
    return
  }
  func.func @transform_0(%arg0: i32) -> (i32, i32, i32) {
    %c0_i32 = arith.constant 0 : i32
    %c0_i32_0 = arith.constant 0 : i32
    %c0_i32_1 = arith.constant 0 : i32
    return %arg0, %c0_i32, %c0_i32_0 : i32, i32, i32
  }
  func.func @transform_1(%arg0: i32) -> (i32, i32, i32) {
    %c0_i32 = arith.constant 0 : i32
    %c0_i32_0 = arith.constant 0 : i32
    %c0_i32_1 = arith.constant 0 : i32
    %c0_i32_2 = arith.constant 0 : i32
    return %c0_i32, %c0_i32_0, %c0_i32_1 : i32, i32, i32
  }
  func.func @transform_2(%arg0: i32) -> (i32, i32) {
    %c0_i32 = arith.constant 0 : i32
    %c0_i32_0 = arith.constant 0 : i32
    %c0_i32_1 = arith.constant 0 : i32
    return %c0_i32, %c0_i32_0 : i32, i32
  }
  func.func @transform_3(%arg0: i32) -> (i32, i32) {
    %c0_i32 = arith.constant 0 : i32
    %c0_i32_0 = arith.constant 0 : i32
    %c0_i32_1 = arith.constant 0 : i32
    return %c0_i32, %c0_i32_0 : i32, i32
  }
  func.func @transform_4(%arg0: i32) -> (i32, i32, i32) {
    %c0_i32 = arith.constant 0 : i32
    %c0_i32_0 = arith.constant 0 : i32
    %c0_i32_1 = arith.constant 0 : i32
    return %arg0, %c0_i32, %c0_i32_0 : i32, i32, i32
  }
  func.func @transform_5(%arg0: i32) -> (i32, i32, i32) {
    %c0_i32 = arith.constant 0 : i32
    %c0_i32_0 = arith.constant 0 : i32
    %c0_i32_1 = arith.constant 0 : i32
    return %arg0, %c0_i32, %c0_i32_0 : i32, i32, i32
  }
}

module attributes {stable_mosaic.version = 11 : i64} {
  func.func @bn_relu_pack_kernel(%arg0: i32, %arg1: memref<1x8x288xf32, #tpu.memory_space<vmem>>, %arg2: memref<8x1xf32, #tpu.memory_space<vmem>>, %arg3: memref<8x1xf32, #tpu.memory_space<vmem>>, %arg4: memref<1x8x256xf32, #tpu.memory_space<vmem>>) attributes {dimension_semantics = [#tpu.dimension_semantics<parallel>], iteration_bounds = array<i64: 2>, scalar_prefetch = 0 : i64, scratch_operands = 0 : i64, tpu.core_type = #tpu.core_type<tc>, window_params = [{transform_indices = @transform_0, window_bounds = array<i64: 1, 8, 288>}, {pipeline_mode = #tpu.pipeline_mode<synchronous>, transform_indices = @transform_1, window_bounds = array<i64: 8, 1>}, {pipeline_mode = #tpu.pipeline_mode<synchronous>, transform_indices = @transform_2, window_bounds = array<i64: 8, 1>}, {transform_indices = @transform_3, window_bounds = array<i64: 1, 8, 256>}]} {
    %c0 = arith.constant 0 : index
    %c0_0 = arith.constant 0 : index
    %c0_1 = arith.constant 0 : index
    %0 = vector.load %arg1[%c0, %c0_0, %c0_1] : memref<1x8x288xf32, #tpu.memory_space<vmem>>, vector<1x8x288xf32>
    %1 = vector.shape_cast %0 : vector<1x8x288xf32> to vector<8x288xf32>
    %c0_2 = arith.constant 0 : index
    %c0_3 = arith.constant 0 : index
    %2 = vector.load %arg2[%c0_2, %c0_3] : memref<8x1xf32, #tpu.memory_space<vmem>>, vector<8x1xf32>
    %3 = vector.broadcast %2 : vector<8x1xf32> to vector<8x288xf32>
    %4 = arith.mulf %1, %3 : vector<8x288xf32>
    %c0_4 = arith.constant 0 : index
    %c0_5 = arith.constant 0 : index
    %5 = vector.load %arg3[%c0_4, %c0_5] : memref<8x1xf32, #tpu.memory_space<vmem>>, vector<8x1xf32>
    %6 = vector.broadcast %5 : vector<8x1xf32> to vector<8x288xf32>
    %7 = arith.addf %4, %6 : vector<8x288xf32>
    %cst = arith.constant 0.000000e+00 : f32
    %8 = vector.broadcast %cst : f32 to vector<8x288xf32>
    %9 = arith.maximumf %7, %8 : vector<8x288xf32>
    %10 = vector.extract_strided_slice %9 {offsets = [0, 0], sizes = [8, 16], strides = [1, 1]} : vector<8x288xf32> to vector<8x16xf32>
    %c0_6 = arith.constant 0 : index
    %c0_7 = arith.constant 0 : index
    %c0_8 = arith.constant 0 : index
    %11 = vector.load %arg4[%c0_6, %c0_7, %c0_8] : memref<1x8x256xf32, #tpu.memory_space<vmem>>, vector<1x8x16xf32>
    %12 = vector.shape_cast %11 : vector<1x8x16xf32> to vector<8x16xf32>
    %13 = vector.shape_cast %10 : vector<8x16xf32> to vector<1x8x16xf32>
    tpu.vector_store %arg4[%c0_6, %c0_7, %c0_8], %13 {strides = array<i32>} : memref<1x8x256xf32, #tpu.memory_space<vmem>>, vector<1x8x16xf32>,
    %14 = vector.extract_strided_slice %9 {offsets = [0, 18], sizes = [8, 16], strides = [1, 1]} : vector<8x288xf32> to vector<8x16xf32>
    %c0_9 = arith.constant 0 : index
    %c0_10 = arith.constant 0 : index
    %c16 = arith.constant 16 : index
    %15 = vector.load %arg4[%c0_9, %c0_10, %c16] : memref<1x8x256xf32, #tpu.memory_space<vmem>>, vector<1x8x16xf32>
    %16 = vector.shape_cast %15 : vector<1x8x16xf32> to vector<8x16xf32>
    %17 = vector.shape_cast %14 : vector<8x16xf32> to vector<1x8x16xf32>
    tpu.vector_store %arg4[%c0_9, %c0_10, %c16], %17 {strides = array<i32>} : memref<1x8x256xf32, #tpu.memory_space<vmem>>, vector<1x8x16xf32>,
    %18 = vector.extract_strided_slice %9 {offsets = [0, 36], sizes = [8, 16], strides = [1, 1]} : vector<8x288xf32> to vector<8x16xf32>
    %c0_11 = arith.constant 0 : index
    %c0_12 = arith.constant 0 : index
    %c32 = arith.constant 32 : index
    %19 = vector.load %arg4[%c0_11, %c0_12, %c32] : memref<1x8x256xf32, #tpu.memory_space<vmem>>, vector<1x8x16xf32>
    %20 = vector.shape_cast %19 : vector<1x8x16xf32> to vector<8x16xf32>
    %21 = vector.shape_cast %18 : vector<8x16xf32> to vector<1x8x16xf32>
    tpu.vector_store %arg4[%c0_11, %c0_12, %c32], %21 {strides = array<i32>} : memref<1x8x256xf32, #tpu.memory_space<vmem>>, vector<1x8x16xf32>,
    %22 = vector.extract_strided_slice %9 {offsets = [0, 54], sizes = [8, 16], strides = [1, 1]} : vector<8x288xf32> to vector<8x16xf32>
    %c0_13 = arith.constant 0 : index
    %c0_14 = arith.constant 0 : index
    %c48 = arith.constant 48 : index
    %23 = vector.load %arg4[%c0_13, %c0_14, %c48] : memref<1x8x256xf32, #tpu.memory_space<vmem>>, vector<1x8x16xf32>
    %24 = vector.shape_cast %23 : vector<1x8x16xf32> to vector<8x16xf32>
    %25 = vector.shape_cast %22 : vector<8x16xf32> to vector<1x8x16xf32>
    tpu.vector_store %arg4[%c0_13, %c0_14, %c48], %25 {strides = array<i32>} : memref<1x8x256xf32, #tpu.memory_space<vmem>>, vector<1x8x16xf32>,
    %26 = vector.extract_strided_slice %9 {offsets = [0, 72], sizes = [8, 16], strides = [1, 1]} : vector<8x288xf32> to vector<8x16xf32>
    %c0_15 = arith.constant 0 : index
    %c0_16 = arith.constant 0 : index
    %c64 = arith.constant 64 : index
    %27 = vector.load %arg4[%c0_15, %c0_16, %c64] : memref<1x8x256xf32, #tpu.memory_space<vmem>>, vector<1x8x16xf32>
    %28 = vector.shape_cast %27 : vector<1x8x16xf32> to vector<8x16xf32>
    %29 = vector.shape_cast %26 : vector<8x16xf32> to vector<1x8x16xf32>
    tpu.vector_store %arg4[%c0_15, %c0_16, %c64], %29 {strides = array<i32>} : memref<1x8x256xf32, #tpu.memory_space<vmem>>, vector<1x8x16xf32>,
    %30 = vector.extract_strided_slice %9 {offsets = [0, 90], sizes = [8, 16], strides = [1, 1]} : vector<8x288xf32> to vector<8x16xf32>
    %c0_17 = arith.constant 0 : index
    %c0_18 = arith.constant 0 : index
    %c80 = arith.constant 80 : index
    %31 = vector.load %arg4[%c0_17, %c0_18, %c80] : memref<1x8x256xf32, #tpu.memory_space<vmem>>, vector<1x8x16xf32>
    %32 = vector.shape_cast %31 : vector<1x8x16xf32> to vector<8x16xf32>
    %33 = vector.shape_cast %30 : vector<8x16xf32> to vector<1x8x16xf32>
    tpu.vector_store %arg4[%c0_17, %c0_18, %c80], %33 {strides = array<i32>} : memref<1x8x256xf32, #tpu.memory_space<vmem>>, vector<1x8x16xf32>,
    %34 = vector.extract_strided_slice %9 {offsets = [0, 108], sizes = [8, 16], strides = [1, 1]} : vector<8x288xf32> to vector<8x16xf32>
    %c0_19 = arith.constant 0 : index
    %c0_20 = arith.constant 0 : index
    %c96 = arith.constant 96 : index
    %35 = vector.load %arg4[%c0_19, %c0_20, %c96] : memref<1x8x256xf32, #tpu.memory_space<vmem>>, vector<1x8x16xf32>
    %36 = vector.shape_cast %35 : vector<1x8x16xf32> to vector<8x16xf32>
    %37 = vector.shape_cast %34 : vector<8x16xf32> to vector<1x8x16xf32>
    tpu.vector_store %arg4[%c0_19, %c0_20, %c96], %37 {strides = array<i32>} : memref<1x8x256xf32, #tpu.memory_space<vmem>>, vector<1x8x16xf32>,
    %38 = vector.extract_strided_slice %9 {offsets = [0, 126], sizes = [8, 16], strides = [1, 1]} : vector<8x288xf32> to vector<8x16xf32>
    %c0_21 = arith.constant 0 : index
    %c0_22 = arith.constant 0 : index
    %c112 = arith.constant 112 : index
    %39 = vector.load %arg4[%c0_21, %c0_22, %c112] : memref<1x8x256xf32, #tpu.memory_space<vmem>>, vector<1x8x16xf32>
    %40 = vector.shape_cast %39 : vector<1x8x16xf32> to vector<8x16xf32>
    %41 = vector.shape_cast %38 : vector<8x16xf32> to vector<1x8x16xf32>
    tpu.vector_store %arg4[%c0_21, %c0_22, %c112], %41 {strides = array<i32>} : memref<1x8x256xf32, #tpu.memory_space<vmem>>, vector<1x8x16xf32>,
    %42 = vector.extract_strided_slice %9 {offsets = [0, 144], sizes = [8, 16], strides = [1, 1]} : vector<8x288xf32> to vector<8x16xf32>
    %c0_23 = arith.constant 0 : index
    %c0_24 = arith.constant 0 : index
    %c128 = arith.constant 128 : index
    %43 = vector.load %arg4[%c0_23, %c0_24, %c128] : memref<1x8x256xf32, #tpu.memory_space<vmem>>, vector<1x8x16xf32>
    %44 = vector.shape_cast %43 : vector<1x8x16xf32> to vector<8x16xf32>
    %45 = vector.shape_cast %42 : vector<8x16xf32> to vector<1x8x16xf32>
    tpu.vector_store %arg4[%c0_23, %c0_24, %c128], %45 {strides = array<i32>} : memref<1x8x256xf32, #tpu.memory_space<vmem>>, vector<1x8x16xf32>,
    %46 = vector.extract_strided_slice %9 {offsets = [0, 162], sizes = [8, 16], strides = [1, 1]} : vector<8x288xf32> to vector<8x16xf32>
    %c0_25 = arith.constant 0 : index
    %c0_26 = arith.constant 0 : index
    %c144 = arith.constant 144 : index
    %47 = vector.load %arg4[%c0_25, %c0_26, %c144] : memref<1x8x256xf32, #tpu.memory_space<vmem>>, vector<1x8x16xf32>
    %48 = vector.shape_cast %47 : vector<1x8x16xf32> to vector<8x16xf32>
    %49 = vector.shape_cast %46 : vector<8x16xf32> to vector<1x8x16xf32>
    tpu.vector_store %arg4[%c0_25, %c0_26, %c144], %49 {strides = array<i32>} : memref<1x8x256xf32, #tpu.memory_space<vmem>>, vector<1x8x16xf32>,
    %50 = vector.extract_strided_slice %9 {offsets = [0, 180], sizes = [8, 16], strides = [1, 1]} : vector<8x288xf32> to vector<8x16xf32>
    %c0_27 = arith.constant 0 : index
    %c0_28 = arith.constant 0 : index
    %c160 = arith.constant 160 : index
    %51 = vector.load %arg4[%c0_27, %c0_28, %c160] : memref<1x8x256xf32, #tpu.memory_space<vmem>>, vector<1x8x16xf32>
    %52 = vector.shape_cast %51 : vector<1x8x16xf32> to vector<8x16xf32>
    %53 = vector.shape_cast %50 : vector<8x16xf32> to vector<1x8x16xf32>
    tpu.vector_store %arg4[%c0_27, %c0_28, %c160], %53 {strides = array<i32>} : memref<1x8x256xf32, #tpu.memory_space<vmem>>, vector<1x8x16xf32>,
    %54 = vector.extract_strided_slice %9 {offsets = [0, 198], sizes = [8, 16], strides = [1, 1]} : vector<8x288xf32> to vector<8x16xf32>
    %c0_29 = arith.constant 0 : index
    %c0_30 = arith.constant 0 : index
    %c176 = arith.constant 176 : index
    %55 = vector.load %arg4[%c0_29, %c0_30, %c176] : memref<1x8x256xf32, #tpu.memory_space<vmem>>, vector<1x8x16xf32>
    %56 = vector.shape_cast %55 : vector<1x8x16xf32> to vector<8x16xf32>
    %57 = vector.shape_cast %54 : vector<8x16xf32> to vector<1x8x16xf32>
    tpu.vector_store %arg4[%c0_29, %c0_30, %c176], %57 {strides = array<i32>} : memref<1x8x256xf32, #tpu.memory_space<vmem>>, vector<1x8x16xf32>,
    %58 = vector.extract_strided_slice %9 {offsets = [0, 216], sizes = [8, 16], strides = [1, 1]} : vector<8x288xf32> to vector<8x16xf32>
    %c0_31 = arith.constant 0 : index
    %c0_32 = arith.constant 0 : index
    %c192 = arith.constant 192 : index
    %59 = vector.load %arg4[%c0_31, %c0_32, %c192] : memref<1x8x256xf32, #tpu.memory_space<vmem>>, vector<1x8x16xf32>
    %60 = vector.shape_cast %59 : vector<1x8x16xf32> to vector<8x16xf32>
    %61 = vector.shape_cast %58 : vector<8x16xf32> to vector<1x8x16xf32>
    tpu.vector_store %arg4[%c0_31, %c0_32, %c192], %61 {strides = array<i32>} : memref<1x8x256xf32, #tpu.memory_space<vmem>>, vector<1x8x16xf32>,
    %62 = vector.extract_strided_slice %9 {offsets = [0, 234], sizes = [8, 16], strides = [1, 1]} : vector<8x288xf32> to vector<8x16xf32>
    %c0_33 = arith.constant 0 : index
    %c0_34 = arith.constant 0 : index
    %c208 = arith.constant 208 : index
    %63 = vector.load %arg4[%c0_33, %c0_34, %c208] : memref<1x8x256xf32, #tpu.memory_space<vmem>>, vector<1x8x16xf32>
    %64 = vector.shape_cast %63 : vector<1x8x16xf32> to vector<8x16xf32>
    %65 = vector.shape_cast %62 : vector<8x16xf32> to vector<1x8x16xf32>
    tpu.vector_store %arg4[%c0_33, %c0_34, %c208], %65 {strides = array<i32>} : memref<1x8x256xf32, #tpu.memory_space<vmem>>, vector<1x8x16xf32>,
    %66 = vector.extract_strided_slice %9 {offsets = [0, 252], sizes = [8, 16], strides = [1, 1]} : vector<8x288xf32> to vector<8x16xf32>
    %c0_35 = arith.constant 0 : index
    %c0_36 = arith.constant 0 : index
    %c224 = arith.constant 224 : index
    %67 = vector.load %arg4[%c0_35, %c0_36, %c224] : memref<1x8x256xf32, #tpu.memory_space<vmem>>, vector<1x8x16xf32>
    %68 = vector.shape_cast %67 : vector<1x8x16xf32> to vector<8x16xf32>
    %69 = vector.shape_cast %66 : vector<8x16xf32> to vector<1x8x16xf32>
    tpu.vector_store %arg4[%c0_35, %c0_36, %c224], %69 {strides = array<i32>} : memref<1x8x256xf32, #tpu.memory_space<vmem>>, vector<1x8x16xf32>,
    %70 = vector.extract_strided_slice %9 {offsets = [0, 270], sizes = [8, 16], strides = [1, 1]} : vector<8x288xf32> to vector<8x16xf32>
    %c0_37 = arith.constant 0 : index
    %c0_38 = arith.constant 0 : index
    %c240 = arith.constant 240 : index
    %71 = vector.load %arg4[%c0_37, %c0_38, %c240] : memref<1x8x256xf32, #tpu.memory_space<vmem>>, vector<1x8x16xf32>
    %72 = vector.shape_cast %71 : vector<1x8x16xf32> to vector<8x16xf32>
    %73 = vector.shape_cast %70 : vector<8x16xf32> to vector<1x8x16xf32>
    tpu.vector_store %arg4[%c0_37, %c0_38, %c240], %73 {strides = array<i32>} : memref<1x8x256xf32, #tpu.memory_space<vmem>>, vector<1x8x16xf32>,
    return
  }
  func.func @transform_0(%arg0: i32) -> (i32, i32, i32) {
    %c0_i32 = arith.constant 0 : i32
    %c0_i32_0 = arith.constant 0 : i32
    %c0_i32_1 = arith.constant 0 : i32
    return %arg0, %c0_i32, %c0_i32_0 : i32, i32, i32
  }
  func.func @transform_1(%arg0: i32) -> (i32, i32) {
    %c0_i32 = arith.constant 0 : i32
    %c0_i32_0 = arith.constant 0 : i32
    %c0_i32_1 = arith.constant 0 : i32
    return %c0_i32, %c0_i32_0 : i32, i32
  }
  func.func @transform_2(%arg0: i32) -> (i32, i32) {
    %c0_i32 = arith.constant 0 : i32
    %c0_i32_0 = arith.constant 0 : i32
    %c0_i32_1 = arith.constant 0 : i32
    return %c0_i32, %c0_i32_0 : i32, i32
  }
  func.func @transform_3(%arg0: i32) -> (i32, i32, i32) {
    %c0_i32 = arith.constant 0 : i32
    %c0_i32_0 = arith.constant 0 : i32
    %c0_i32_1 = arith.constant 0 : i32
    return %arg0, %c0_i32, %c0_i32_0 : i32, i32, i32
  }
}

</mosaic_0001>

<bundles_post_ra>
// kernel: conv_cell_forward.3
= control target key start
LH: loop header
LB: loop body
LE: loop exit
PB: predicated region body
PF: predicated region fallthrough
CT: control target
= control target key end

     0   :  { %s411_s12 = smov 0   ;;  %s454_s0 = inlined_call_operand.vmem [shape: f32[2,8,288], index: 0, kind: input, shape index: {}]   ;;  %s455_s1 = inlined_call_operand.vmem [shape: f32[8,1], index: 1, kind: input, shape index: {}]   ;;  %s456_s2 = inlined_call_operand.vmem [shape: f32[8,1], index: 2, kind: input, shape index: {}]   ;;  %s457_s3 = inlined_call_operand.vmem [shape: f32[2,8,256], index: 3, kind: output, shape index: {}]  }
   0x1 LB: > { %s330_s13 = sadd.s32 4294967295, %s373_s12   ;;  %p334_p0 = scmp.ge.s32.totalorder %s373_s12, 1  ;;  %s373_s12 = sphi %s411_s12, %s13_s12  }
   0x2   : > { %p137_p1 = scmp.lt.s32.totalorder %s373_s12, 3 }
   0x4   : > { %p138_p2 = pnand %p334_p0, %p137_p1 }
   0x5   : > { %v174_v0 = vld [vmem:[%s455_s1] sm:$0xff] (!%p138_p2)  ;;  %v375_v1 = vmov (!%p138_p2), 0   ;;  %p161_p3 = scmp.lt.s32.totalorder (!%p138_p2), %s330_s13, 1  ;;  %vm195_vm0 = vcmask (!%p138_p2), 130048   ;;  %s376_s26 = smov (!%p138_p2), 110   ;;  %vm201_vm1 = vcmask (!%p138_p2), 261248  }
   0x6   : > { %141 = sbr.rel (%p138_p2) target bundleno = 292 (0x124), region = 32  ;;  %366 = vset.pattern.permute.xlu0 (!%p138_p2), %v375_v1  ;;  %v183_v2 = vld [vmem:[%s456_s2] sm:$0xff] (!%p138_p2)  ;;  %s377_s27 = smov (!%p138_p2), 112   ;;  %vm206_vm2 = vcmask (!%p138_p2), 392448   ;;  %vm211_vm3 = vcmask (!%p138_p2), 523648   ;;  %vm216_vm4 = vcmask (!%p138_p2), 654848  }
   0x7   : > { %177 = vperm.xlu0 (!%p138_p2), %366, %v174_v0   ;;  %s378_s28 = smov (!%p138_p2), 108   ;;  %s379_s29 = smov (!%p138_p2), 126   ;;  %vm221_vm5 = vcmask (!%p138_p2), 786048   ;;  %vm267_vm6 = vcmask (!%p138_p2), 818176   ;;  %vm226_vm7 = vcmask (!%p138_p2), 917248   ;;  %vm236_vm8 = vcmask (!%p138_p2), 1048448  }
   0x8   : > { %s380_s30 = smov (!%p138_p2), 106   ;;  %s381_s4 = smov (!%p138_p2), 124   ;;  %vm233_vm9 = vcmask (!%p138_p2), 932864  }
   0x9   : > { %s382_s5 = smov (!%p138_p2), 104   ;;  %s383_s6 = smov (!%p138_p2), 122  }
   0xa   : > { %s384_s7 = smov (!%p138_p2), 102   ;;  %s385_s8 = smov (!%p138_p2), 120  }
   0xb   : > { %186 = vperm.xlu0 (!%p138_p2), %366, %v183_v2   ;;  %s386_s9 = smov (!%p138_p2), 100   ;;  %s387_s10 = smov (!%p138_p2), 118  }
   0xc   : > { %s388_s11 = smov (!%p138_p2), 114   ;;  %s390_s14 = smov (!%p138_p2), 116  }
   0xd   : > { %s459_s13 = smov (!%p161_p3, %s330_s13), 1 }
   0xe   : > { %s341_s18 = smul.u32 24, %s459_s13  ;;  %s340_s22 = sshll.u32 %s459_s13, 4 }
   0xf   : > { %s431_s25 = scalar_lea.vmem %s457_s3, %s340_s22  ;;  %s389_s13 = smov 98  }
  0x10   : > { %s165_s21 = scalar_lea.vmem %s454_s0, %s341_s18 }
  0x11   : > { %v171_v4 = vld [vmem:[%s165_s21] sm:$0xff]  ;;  %v172_v5 = vld [vmem:[%s165_s21 + $0x8] sm:$0xff]  ;;  %v173_v13 = vld [vmem:[%s165_s21 + $0x10] sm:$0xff] }
  0x86   : > { %v178_v3 = vpop.permute.xlu0 %177 }
  0x87   : > { %v180_v6 = vmul.f32 %v178_v3, %v171_v4  ;;  %v181_v7 = vmul.f32 %v178_v3, %v172_v5  ;;  %v182_v14 = vmul.f32 %v178_v3, %v173_v13 }
  0x8a   : > { %v187_v8 = vpop.permute.xlu0 %186 }
  0x8b   : > { %v189_v9 = vadd.f32 %v187_v8, %v180_v6  ;;  %v190_v10 = vadd.f32 %v187_v8, %v181_v7  ;;  %v191_v15 = vadd.f32 %v187_v8, %v182_v14 }
  0x8d   : > { %v192_v11 = vmax.f32 %v189_v9, 0.0  ;;  %v193_v12 = vmax.f32 %v190_v10, 0.0  ;;  %v194_v16 = vmax.f32 %v191_v15, 0.0 }
  0x8f   : > { %242 = vrot.lane.b32.xlu0 %v193_v12, %s376_s26  ;;  %238 = vrot.lane.b32.xlu1 %v193_v12, %s377_s27  ;;  %196 = vst.msk [vmem:[%s431_s25] sm:$0xff] %vm195_vm0, %v192_v11 }
  0x93   : > { %246 = vrot.lane.b32.xlu0 %v193_v12, %s378_s28  ;;  %198 = vrot.lane.b32.xlu1 %v192_v11, %s379_s29 }
  0x97   : > { %250 = vrot.lane.b32.xlu0 %v193_v12, %s380_s30  ;;  %203 = vrot.lane.b32.xlu1 %v192_v11, %s381_s4 }
  0x9b   : > { %254 = vrot.lane.b32.xlu0 %v193_v12, %s382_s5  ;;  %208 = vrot.lane.b32.xlu1 %v192_v11, %s383_s6 }
  0x9f   : > { %258 = vrot.lane.b32.xlu0 %v193_v12, %s384_s7  ;;  %213 = vrot.lane.b32.xlu1 %v192_v11, %s385_s8 }
  0xa3   : > { %265 = vrot.lane.b32.xlu0 %v194_v16, %s386_s9  ;;  %218 = vrot.lane.b32.xlu1 %v192_v11, %s387_s10 }
  0xa7   : > { %229 = vrot.lane.b32.xlu0 %v192_v11, %s388_s11  ;;  %263 = vrot.lane.b32.xlu1 %v193_v12, %s386_s9 }
  0xab   : > { %271 = vrot.lane.b32.xlu0 %v194_v16, %s389_s13  ;;  %223 = vrot.lane.b32.xlu1 %v192_v11, %s390_s14 }
  0xaf   : > { %231 = vrot.lane.b32.xlu1 %v193_v12, %s388_s11 }
 0x101   : > { %v243_v17 = vpop.permute.xlu0 %242  ;;  %v239_v18 = vpop.permute.xlu1 %238 }
 0x102   : > { %241 = vst.msk [vmem:[%s431_s25 + $0x8] sm:$0xff] %vm195_vm0, %v239_v18 }
 0x103   : > { %245 = vst.msk [vmem:[%s431_s25 + $0x8] sm:$0xff] %vm201_vm1, %v243_v17 }
 0x105   : > { %v247_v19 = vpop.permute.xlu0 %246  ;;  %v199_v20 = vpop.permute.xlu1 %198 }
 0x106   : > { %249 = vst.msk [vmem:[%s431_s25 + $0x8] sm:$0xff] %vm206_vm2, %v247_v19 }
 0x107   : > { %202 = vst.msk [vmem:[%s431_s25] sm:$0xff] %vm201_vm1, %v199_v20 }
 0x109   : > { %v251_v21 = vpop.permute.xlu0 %250  ;;  %v204_v22 = vpop.permute.xlu1 %203 }
 0x10a   : > { %253 = vst.msk [vmem:[%s431_s25 + $0x8] sm:$0xff] %vm211_vm3, %v251_v21 }
 0x10b   : > { %207 = vst.msk [vmem:[%s431_s25] sm:$0xff] %vm206_vm2, %v204_v22 }
 0x10d   : > { %v255_v23 = vpop.permute.xlu0 %254  ;;  %v209_v24 = vpop.permute.xlu1 %208 }
 0x10e   : > { %257 = vst.msk [vmem:[%s431_s25 + $0x8] sm:$0xff] %vm216_vm4, %v255_v23 }
 0x10f   : > { %212 = vst.msk [vmem:[%s431_s25] sm:$0xff] %vm211_vm3, %v209_v24 }
 0x111   : > { %v259_v25 = vpop.permute.xlu0 %258  ;;  %v214_v26 = vpop.permute.xlu1 %213 }
 0x112   : > { %261 = vst.msk [vmem:[%s431_s25 + $0x8] sm:$0xff] %vm221_vm5, %v259_v25 }
 0x113   : > { %217 = vst.msk [vmem:[%s431_s25] sm:$0xff] %vm216_vm4, %v214_v26 }
 0x115   : > { %v266_v27 = vpop.permute.xlu0 %265  ;;  %v219_v28 = vpop.permute.xlu1 %218 }
 0x116   : > { %222 = vst.msk [vmem:[%s431_s25] sm:$0xff] %vm221_vm5, %v219_v28 }
 0x119   : > { %v230_v29 = vpop.permute.xlu0 %229  ;;  %v264_v30 = vpop.permute.xlu1 %263 }
 0x11a   : > { %v268_v31 = vsel %vm267_vm6, %v264_v30, %v266_v27 }
 0x11b   : > { %270 = vst.msk [vmem:[%s431_s25 + $0x8] sm:$0xff] %vm226_vm7, %v268_v31 }
 0x11d   : > { %v272_v32 = vpop.permute.xlu0 %271  ;;  %v224_v33 = vpop.permute.xlu1 %223 }
 0x11e   : > { %274 = vst.msk [vmem:[%s431_s25 + $0x8] sm:$0xff] %vm236_vm8, %v272_v32 }
 0x11f   : > { %227 = vst.msk [vmem:[%s431_s25] sm:$0xff] %vm226_vm7, %v224_v33 }
 0x121   : > { %v232_v34 = vpop.permute.xlu1 %231 }
 0x122   : > { %v234_v35 = vsel %vm233_vm9, %v230_v29, %v232_v34 }
 0x123   : > { %237 = vst.msk [vmem:[%s431_s25] sm:$0xff] %vm236_vm8, %v234_v35 }
 0x124 PF: > { %s13_s12 = sadd.s32 1, %s373_s12  }
 0x125   : > { %p10_p4 = scmp.ge.s32.totalorder %s13_s12, 4  }
 0x127   :  { %12 = sbr.rel (!%p10_p4) target bundleno = 1 (0x1), region = 62 }

// kernel: conv_cell_forward.2
= control target key start
LH: loop header
LB: loop body
LE: loop exit
PB: predicated region body
PF: predicated region fallthrough
CT: control target
= control target key end

     0   :  { %s1671_s18 = smov 0   ;;  %s1864_s0 = inlined_call_operand.vmem [shape: bf16[2,4,384], index: 0, kind: input, shape index: {}]   ;;  %s1865_s1 = inlined_call_operand.vmem [shape: bf16[9,8,4], index: 1, kind: input, shape index: {}]   ;;  %s1866_s2 = inlined_call_operand.vmem [shape: f32[8,1], index: 2, kind: input, shape index: {}]   ;;  %s1867_s3 = inlined_call_operand.vmem [shape: f32[1,288], index: 3, kind: input, shape index: {}]   ;;  %s1868_s4 = inlined_call_operand.vmem [shape: f32[2,8,288], index: 4, kind: output, shape index: {0}]   ;;  %s1869_s5 = inlined_call_operand.vmem [shape: f32[2,8,2], index: 5, kind: output, shape index: {1}]  }
   0x1 LB: > { %s1473_s19 = sadd.s32 4294967295, %s1627_s18   ;;  %p1477_p0 = scmp.ge.s32.totalorder %s1627_s18, 1  ;;  %s1627_s18 = sphi %s1671_s18, %s16_s18  }
   0x2   : > { %p190_p1 = scmp.lt.s32.totalorder %s1627_s18, 3 }
   0x4   : > { %p191_p2 = pnand %p1477_p0, %p190_p1 }
   0x5   : > { %p222_p3 = scmp.lt.s32.totalorder (!%p191_p2), %s1473_s19, 1  ;;  %v246_v0 = vlaneseq (!%p191_p2)  ;;  %v1629_v1 = vmov (!%p191_p2), 1983009808   ;;  %v1630_v3 = vmov (!%p191_p2), 0.0   ;;  %vm1631_vm0 = vmmov (!%p191_p2), 0   ;;  %s1633_s24 = smov (!%p191_p2), 127  }
   0x6   : > { %194 = sbr.rel (%p191_p2) target bundleno = 728 (0x2d8), region = 36  ;;  %v244_v2 = vunpack.c.l.s4 (!%p191_p2), %v1629_v1  ;;  %1536 = vmatprep.subr.bf16.mxu1 (!%p191_p2), %v1630_v3  ;;  %1538 = vmatprep.mubr.msk.bf16.mxu1 (!%p191_p2), %vm1631_vm0, %v1630_v3  ;;  %v1632_v6 = vmov (!%p191_p2), 0   ;;  %s1634_s25 = smov (!%p191_p2), 126   ;;  %v1330_v48 = vld [vmem:[%s1866_s2] sm:$0xff] (!%p191_p2)  ;;  %vm271_vm1 = vcmask (!%p191_p2), 1041408   ;;  %vm264_vm2 = vcmask (!%p191_p2), 1039360  }
   0x7   : > { %v1682_v4 = vshrl.u32 (!%p191_p2), %v246_v0, 7  ;;  %313 = vmatprep.mubr.bf16.mxu0 (!%p191_p2), %v1632_v6  ;;  %1612 = vset.pattern.permute.xlu0 (!%p191_p2), %v1632_v6  ;;  %s1635_s26 = smov (!%p191_p2), 110   ;;  %s1636_s27 = smov (!%p191_p2), 109   ;;  %v1481_v53 = vld [vmem:[%s1865_s1 + $0x4] sm:$0xf] (!%p191_p2)  ;;  %vm267_vm3 = vcmask (!%p191_p2), 31744  }
   0x8   : > { %v245_v5 = vunpack.c.0.s8 (!%p191_p2), %v244_v2  ;;  %s1637_s28 = smov (!%p191_p2), 108   ;;  %s1638_s29 = smov (!%p191_p2), 92   ;;  %vm481_vm4 = vcmask (!%p191_p2), 1031168   ;;  %v238_v63 = vld [vmem:[%s1865_s1] sm:$0xf] (!%p191_p2)  ;;  %vm606_vm5 = vcmask (!%p191_p2), 900096  }
   0x9   : > { %s1639_s30 = smov (!%p191_p2), 91   ;;  %s1640_s6 = smov (!%p191_p2), 90   ;;  %vm731_vm6 = vcmask (!%p191_p2), 891904   ;;  %vm856_vm7 = vcmask (!%p191_p2), 883712   ;;  %vm981_vm8 = vcmask (!%p191_p2), 752640   ;;  %vm1106_vm9 = vcmask (!%p191_p2), 744448  }
   0xa   : > { %v1690_v7 = vsub.s32 (!%p191_p2), %v245_v5, %v1682_v4  ;;  %vm1231_vm10 = vcmask (!%p191_p2), 736256   ;;  %vm1341_vm11 = vcmask (!%p191_p2), 261120   ;;  %vm1383_vm12 = vcmask (!%p191_p2), 7168  }
   0xb   : > { %vm1385_vm13 = vcmask (!%p191_p2), 15368  }
   0xd   : > { %s1871_s19 = smov (!%p222_p3, %s1473_s19), 1 }
   0xe   : > { %s1590_s20 = smul.u32 6, %s1871_s19  ;;  %s1480_s10 = sshll.u32 %s1871_s19, 3 }
   0xf   : > { %s235_s13 = scalar_lea.vmem %s1869_s5, %s1480_s10 }
  0x10   : > { %s1695_s23 = scalar_lea.vmem %s1864_s0, %s1590_s20 }
  0x11   : > { %v237_v8 = vld [vmem:[%s1695_s23] sm:$0x3f] }
  0x12   : > { %v1699_v9 = vrot.slane %v237_v8, %v1690_v7  ;;  %v242_v10 = vcombine.high %v237_v8, %v237_v8  ;;  %v455_v11 = vld [vmem:[%s1695_s23] sm:$0x3f] }
  0x13   : > { %v466_v14 = vrot.slane %v455_v11, %v1690_v7  ;;  %v459_v15 = vcombine.high %v455_v11, %v455_v11  ;;  %v580_v17 = vld [vmem:[%s1695_s23] sm:$0x3f]  ;;  %v1488_v11 = vld [vmem:[%s1865_s1 + $0x8] sm:$0xf] }
  0x14   : > { %258 = vrot.lane.b32.xlu0 %v1699_v9, %s1633_s24  ;;  %v1704_v12 = vrot.slane %v242_v10, %v1690_v7  ;;  %v1708_v13 = vcombine.high %v1699_v9, %v1699_v9  ;;  %v591_v19 = vrot.slane %v580_v17, %v1690_v7  ;;  %v584_v20 = vcombine.high %v580_v17, %v580_v17  ;;  %v705_v22 = vld [vmem:[%s1695_s23] sm:$0x3f] }
  0x15   : > { %v474_v16 = vcombine.high %v466_v14, %v466_v14  ;;  %v473_v18 = vrot.slane %v459_v15, %v1690_v7  ;;  %v716_v24 = vrot.slane %v705_v22, %v1690_v7  ;;  %v709_v25 = vcombine.high %v705_v22, %v705_v22  ;;  %v830_v27 = vld [vmem:[%s1695_s23] sm:$0x3f] }
  0x16   : > { %262 = vrot.lane.b32.xlu1 %v1704_v12, %s1633_s24  ;;  %v599_v21 = vcombine.high %v591_v19, %v591_v19  ;;  %v598_v23 = vrot.slane %v584_v20, %v1690_v7  ;;  %v841_v29 = vrot.slane %v830_v27, %v1690_v7  ;;  %v834_v30 = vcombine.high %v830_v27, %v830_v27  ;;  %v955_v32 = vld [vmem:[%s1695_s23] sm:$0x3f]  ;;  %v1492_v20 = vld [vmem:[%s1865_s1 + $0xc] sm:$0xf] }
  0x17   : > { %v724_v26 = vcombine.high %v716_v24, %v716_v24  ;;  %v723_v28 = vrot.slane %v709_v25, %v1690_v7  ;;  %v966_v34 = vrot.slane %v955_v32, %v1690_v7  ;;  %v959_v35 = vcombine.high %v955_v32, %v955_v32  ;;  %v1080_v37 = vld [vmem:[%s1695_s23] sm:$0x3f] }
  0x18   : > { %260 = vrot.lane.b32.xlu0 %v1708_v13, %s1633_s24  ;;  %v849_v31 = vcombine.high %v841_v29, %v841_v29  ;;  %v848_v33 = vrot.slane %v834_v30, %v1690_v7  ;;  %v1091_v39 = vrot.slane %v1080_v37, %v1690_v7  ;;  %v1084_v40 = vcombine.high %v1080_v37, %v1080_v37  ;;  %v1205_v42 = vld [vmem:[%s1695_s23] sm:$0x3f] }
  0x19   : > { %v974_v36 = vcombine.high %v966_v34, %v966_v34  ;;  %v973_v38 = vrot.slane %v959_v35, %v1690_v7  ;;  %v1216_v44 = vrot.slane %v1205_v42, %v1690_v7  ;;  %v1209_v45 = vcombine.high %v1205_v42, %v1205_v42 }
  0x1a   : > { %475 = vrot.lane.b32.xlu1 %v466_v14, %s1634_s25  ;;  %v1099_v41 = vcombine.high %v1091_v39, %v1091_v39  ;;  %v1098_v43 = vrot.slane %v1084_v40, %v1690_v7  ;;  %v372_v56 = vsel %vm271_vm1, %v1704_v12, 0  ;;  %v366_v59 = vsel %vm271_vm1, %v1699_v9, 0 }
  0x1b   : > { %v1224_v46 = vcombine.high %v1216_v44, %v1216_v44  ;;  %v1223_v47 = vrot.slane %v1209_v45, %v1690_v7 }
  0x1c   : > { %477 = vrot.lane.b32.xlu0 %v474_v16, %s1634_s25 }
  0x1e   : > { %479 = vrot.lane.b32.xlu1 %v473_v18, %s1634_s25 }
  0x20   : > { %600 = vrot.lane.b32.xlu0 %v591_v19, %s1635_s26 }
  0x22   : > { %602 = vrot.lane.b32.xlu1 %v599_v21, %s1635_s26 }
  0x24   : > { %604 = vrot.lane.b32.xlu0 %v598_v23, %s1635_s26 }
  0x26   : > { %725 = vrot.lane.b32.xlu1 %v716_v24, %s1636_s27 }
  0x28   : > { %727 = vrot.lane.b32.xlu0 %v724_v26, %s1636_s27 }
  0x2a   : > { %729 = vrot.lane.b32.xlu1 %v723_v28, %s1636_s27  ;;  %v1496_v28 = vld [vmem:[%s1865_s1 + $0x10] sm:$0xf] }
  0x2c   : > { %850 = vrot.lane.b32.xlu0 %v841_v29, %s1637_s28 }
  0x2e   : > { %852 = vrot.lane.b32.xlu1 %v849_v31, %s1637_s28 }
  0x30   : > { %854 = vrot.lane.b32.xlu0 %v848_v33, %s1637_s28 }
  0x32   : > { %975 = vrot.lane.b32.xlu1 %v966_v34, %s1638_s29 }
  0x34   : > { %977 = vrot.lane.b32.xlu0 %v974_v36, %s1638_s29  ;;  %v1500_v36 = vld [vmem:[%s1865_s1 + $0x14] sm:$0xf] }
  0x36   : > { %979 = vrot.lane.b32.xlu1 %v973_v38, %s1638_s29  ;;  %s1591_s29 = smul.u32 24, %s1871_s19 }
  0x38   : > { %1100 = vrot.lane.b32.xlu0 %v1091_v39, %s1639_s30  ;;  %s231_s9 = scalar_lea.vmem %s1868_s4, %s1591_s29 }
  0x3a   : > { %1102 = vrot.lane.b32.xlu1 %v1099_v41, %s1639_s30 }
  0x3c   : > { %1104 = vrot.lane.b32.xlu0 %v1098_v43, %s1639_s30  ;;  %v1504_v43 = vld [vmem:[%s1865_s1 + $0x18] sm:$0xf] }
  0x3e   : > { %1225 = vrot.lane.b32.xlu1 %v1216_v44, %s1640_s6 }
  0x40   : > { %1227 = vrot.lane.b32.xlu0 %v1224_v46, %s1640_s6 }
  0x42   : > { %1229 = vrot.lane.b32.xlu1 %v1223_v47, %s1640_s6 }
  0x44   : > { %1333 = vperm.xlu0 %1612, %v1330_v48  }
  0x86   : > { %v259_v49 = vpop.permute.xlu0 %258 }
  0x88   : > { %v263_v50 = vpop.permute.xlu1 %262 }
  0x89   : > { %v279_v51 = vsel %vm271_vm1, %v263_v50, 0 }
  0x8a   : > { %v261_v52 = vpop.permute.xlu0 %260  ;;  %1537 = vmatpush3.bf16.msra.mxu1 %v279_v51 }
  0x8b   : > { %v266_v54 = vsel %vm264_vm2, %v261_v52, %v263_v50  ;;  %v265_v55 = vsel %vm264_vm2, %v259_v49, %v261_v52  ;;  %1542 = vmatprep.subr.bf16.mxu1 %v1630_v3  ;;  %v1508_v50 = vld [vmem:[%s1865_s1 + $0x1c] sm:$0xf] }
  0x8c   : > { %1482 = vmatprep.subr.msk.bf16.mxu0 %vm271_vm1, %v266_v54  ;;  %v273_v57 = vsel %vm271_vm1, %v265_v55, 0  ;;  %v476_v58 = vpop.permute.xlu1 %475  ;;  %v1512_v54 = vld [vmem:[%s1865_s1 + $0x20] sm:$0xf] }
  0x8d   : > { %282 = vmatpush1.bf16.msra.mxu0 %v273_v57  ;;  %1539 = vmatmul.mubr.msk.bf16.vlgmr.msra.gmra.mrb[0].mxu1 %vm267_vm3, %v1481_v53 }
  0x8e   : > { %1485 = vmatprep.subr.msk.bf16.mxu0 %vm271_vm1, %v1708_v13  ;;  %v478_v60 = vpop.permute.xlu0 %477  ;;  %1543 = vmatpush3.bf16.msra.mxu1 %v372_v56 }
  0x8f   : > { %1544 = vmatprep.mubr.msk.bf16.mxu1 %vm1631_vm0, %v1630_v3  ;;  %1548 = vmatprep.subr.bf16.mxu1 %v1630_v3  ;;  %v482_v1 = vsel %vm481_vm4, %v476_v58, %v478_v60 }
  0x90   : > { %1483 = vmatmul.mubr.msk.bf16.vlgmr.msra.gmra.mrb[0].mxu0 %vm267_vm3, %v1481_v53  ;;  %v480_v61 = vpop.permute.xlu1 %479  ;;  %v488_v7 = vsel %vm271_vm1, %v482_v1, 0 }
  0x91   : > { %375 = vmatpush1.bf16.msra.mxu0 %v366_v59  ;;  %v483_v62 = vsel %vm481_vm4, %v478_v60, %v480_v61  ;;  %406 = vmatprep.mubr.bf16.mxu0 %v1632_v6  ;;  %v494_v2 = vsel %vm271_vm1, %v480_v61, 0 }
  0x92   : > { %1489 = vmatprep.subr.msk.bf16.mxu0 %vm271_vm1, %v483_v62  ;;  %v601_v0 = vpop.permute.xlu0 %600 }
  0x94   : > { %v603_v5 = vpop.permute.xlu1 %602 }
  0x95   : > { %1545 = vmatmul.mubr.msk.bf16.vlgmr.msra.gmra.mrb[4].mxu1 %vm267_vm3, %v238_v63  ;;  %v607_v13 = vsel %vm606_vm5, %v601_v0, %v603_v5 }
  0x96   : > { %1549 = vmatpush3.bf16.msra.mxu1 %v494_v2  ;;  %1550 = vmatprep.mubr.msk.bf16.mxu1 %vm1631_vm0, %v1630_v3  ;;  %v605_v8 = vpop.permute.xlu0 %604  ;;  %v613_v16 = vsel %vm271_vm1, %v607_v13, 0 }
  0x97   : > { %v608_v9 = vsel %vm606_vm5, %v603_v5, %v605_v8  ;;  %1554 = vmatprep.subr.bf16.mxu1 %v1630_v3  ;;  %v619_v14 = vsel %vm271_vm1, %v605_v8, 0 }
  0x98   : > { %1486 = vmatmul.mubr.msk.bf16.vlgmr.msra.gmra.mrb[4].mxu0 %vm267_vm3, %v238_v63  ;;  %v726_v10 = vpop.permute.xlu1 %725 }
  0x99   : > { %497 = vmatpush1.bf16.msra.mxu0 %v488_v7  ;;  %528 = vmatprep.mubr.bf16.mxu0 %v1632_v6 }
  0x9a   : > { %1493 = vmatprep.subr.msk.bf16.mxu0 %vm271_vm1, %v608_v9  ;;  %v728_v12 = vpop.permute.xlu0 %727 }
  0x9b   : > { %v732_v21 = vsel %vm731_vm6, %v726_v10, %v728_v12 }
  0x9c   : > { %v730_v15 = vpop.permute.xlu1 %729  ;;  %v738_v24 = vsel %vm271_vm1, %v732_v21, 0 }
  0x9d   : > { %1551 = vmatmul.mubr.msk.bf16.vlgmr.msra.gmra.mrb[8].mxu1 %vm267_vm3, %v1488_v11  ;;  %v733_v18 = vsel %vm731_vm6, %v728_v12, %v730_v15  ;;  %v744_v22 = vsel %vm271_vm1, %v730_v15, 0 }
  0x9e   : > { %1555 = vmatpush3.bf16.msra.mxu1 %v619_v14  ;;  %1556 = vmatprep.mubr.msk.bf16.mxu1 %vm1631_vm0, %v1630_v3  ;;  %v851_v17 = vpop.permute.xlu0 %850 }
  0x9f   : > { %1560 = vmatprep.subr.bf16.mxu1 %v1630_v3 }
  0xa0   : > { %1490 = vmatmul.mubr.msk.bf16.vlgmr.msra.gmra.mrb[8].mxu0 %vm267_vm3, %v1488_v11  ;;  %v853_v19 = vpop.permute.xlu1 %852 }
  0xa1   : > { %622 = vmatpush1.bf16.msra.mxu0 %v613_v16  ;;  %653 = vmatprep.mubr.bf16.mxu0 %v1632_v6  ;;  %v857_v29 = vsel %vm856_vm7, %v851_v17, %v853_v19 }
  0xa2   : > { %1497 = vmatprep.subr.msk.bf16.mxu0 %vm271_vm1, %v733_v18  ;;  %v855_v23 = vpop.permute.xlu0 %854  ;;  %v863_v32 = vsel %vm271_vm1, %v857_v29, 0 }
  0xa3   : > { %v858_v26 = vsel %vm856_vm7, %v853_v19, %v855_v23  ;;  %v869_v30 = vsel %vm271_vm1, %v855_v23, 0 }
  0xa4   : > { %v976_v25 = vpop.permute.xlu1 %975 }
  0xa5   : > { %1557 = vmatmul.mubr.msk.bf16.vlgmr.msra.gmra.mrb[12].mxu1 %vm267_vm3, %v1492_v20 }
  0xa6   : > { %1561 = vmatpush3.bf16.msra.mxu1 %v744_v22  ;;  %1562 = vmatprep.mubr.msk.bf16.mxu1 %vm1631_vm0, %v1630_v3  ;;  %v978_v27 = vpop.permute.xlu0 %977 }
  0xa7   : > { %1566 = vmatprep.subr.bf16.mxu1 %v1630_v3  ;;  %v982_v37 = vsel %vm981_vm8, %v976_v25, %v978_v27 }
  0xa8   : > { %1494 = vmatmul.mubr.msk.bf16.vlgmr.msra.gmra.mrb[12].mxu0 %vm267_vm3, %v1492_v20  ;;  %v980_v31 = vpop.permute.xlu1 %979  ;;  %v988_v40 = vsel %vm271_vm1, %v982_v37, 0 }
  0xa9   : > { %747 = vmatpush1.bf16.msra.mxu0 %v738_v24  ;;  %778 = vmatprep.mubr.bf16.mxu0 %v1632_v6  ;;  %v983_v34 = vsel %vm981_vm8, %v978_v27, %v980_v31  ;;  %v994_v38 = vsel %vm271_vm1, %v980_v31, 0 }
  0xaa   : > { %1501 = vmatprep.subr.msk.bf16.mxu0 %vm271_vm1, %v858_v26  ;;  %v1101_v33 = vpop.permute.xlu0 %1100 }
  0xac   : > { %v1103_v35 = vpop.permute.xlu1 %1102 }
  0xad   : > { %1563 = vmatmul.mubr.msk.bf16.vlgmr.msra.gmra.mrb[16].mxu1 %vm267_vm3, %v1496_v28  ;;  %v1107_v44 = vsel %vm1106_vm9, %v1101_v33, %v1103_v35 }
  0xae   : > { %1567 = vmatpush3.bf16.msra.mxu1 %v869_v30  ;;  %1568 = vmatprep.mubr.msk.bf16.mxu1 %vm1631_vm0, %v1630_v3  ;;  %v1105_v39 = vpop.permute.xlu0 %1104  ;;  %v1113_v48 = vsel %vm271_vm1, %v1107_v44, 0 }
  0xaf   : > { %1572 = vmatprep.subr.bf16.mxu1 %v1630_v3  ;;  %v1108_v42 = vsel %vm1106_vm9, %v1103_v35, %v1105_v39  ;;  %v1119_v45 = vsel %vm271_vm1, %v1105_v39, 0 }
  0xb0   : > { %1498 = vmatmul.mubr.msk.bf16.vlgmr.msra.gmra.mrb[16].mxu0 %vm267_vm3, %v1496_v28  ;;  %v1226_v41 = vpop.permute.xlu1 %1225 }
  0xb1   : > { %872 = vmatpush1.bf16.msra.mxu0 %v863_v32  ;;  %903 = vmatprep.mubr.bf16.mxu0 %v1632_v6 }
  0xb2   : > { %1505 = vmatprep.subr.msk.bf16.mxu0 %vm271_vm1, %v983_v34  ;;  %v1228_v46 = vpop.permute.xlu0 %1227 }
  0xb3   : > { %v1232_v51 = vsel %vm1231_vm10, %v1226_v41, %v1228_v46 }
  0xb4   : > { %v1230_v47 = vpop.permute.xlu1 %1229  ;;  %v1238_v53 = vsel %vm271_vm1, %v1232_v51, 0 }
  0xb5   : > { %1569 = vmatmul.mubr.msk.bf16.vlgmr.msra.gmra.mrb[20].mxu1 %vm267_vm3, %v1500_v36  ;;  %v1233_v49 = vsel %vm1231_vm10, %v1228_v46, %v1230_v47  ;;  %v1244_v52 = vsel %vm271_vm1, %v1230_v47, 0 }
  0xb6   : > { %1573 = vmatpush3.bf16.msra.mxu1 %v994_v38  ;;  %1574 = vmatprep.mubr.msk.bf16.mxu1 %vm1631_vm0, %v1630_v3 }
  0xb7   : > { %1578 = vmatprep.subr.bf16.mxu1 %v1630_v3 }
  0xb8   : > { %1502 = vmatmul.mubr.msk.bf16.vlgmr.msra.gmra.mrb[20].mxu0 %vm267_vm3, %v1500_v36 }
  0xb9   : > { %997 = vmatpush1.bf16.msra.mxu0 %v988_v40  ;;  %1028 = vmatprep.mubr.bf16.mxu0 %v1632_v6 }
  0xba   : > { %1509 = vmatprep.subr.msk.bf16.mxu0 %vm271_vm1, %v1108_v42 }
  0xbd   : > { %1575 = vmatmul.mubr.msk.bf16.vlgmr.msra.gmra.mrb[24].mxu1 %vm267_vm3, %v1504_v43 }
  0xbe   : > { %1579 = vmatpush3.bf16.msra.mxu1 %v1119_v45  ;;  %1580 = vmatprep.mubr.msk.bf16.mxu1 %vm1631_vm0, %v1630_v3 }
  0xbf   : > { %1584 = vmatprep.subr.bf16.mxu1 %v1630_v3 }
  0xc0   : > { %1506 = vmatmul.mubr.msk.bf16.vlgmr.msra.gmra.mrb[24].mxu0 %vm267_vm3, %v1504_v43 }
  0xc1   : > { %1122 = vmatpush1.bf16.msra.mxu0 %v1113_v48  ;;  %1153 = vmatprep.mubr.bf16.mxu0 %v1632_v6 }
  0xc2   : > { %1513 = vmatprep.subr.msk.bf16.mxu0 %vm271_vm1, %v1233_v49 }
  0xc5   : > { %1581 = vmatmul.mubr.msk.bf16.vlgmr.msra.gmra.mrb[28].mxu1 %vm267_vm3, %v1508_v50 }
  0xc6   : > { %1585 = vmatpush3.bf16.msra.mxu1 %v1244_v52  ;;  %1586 = vmatprep.mubr.msk.bf16.mxu1 %vm1631_vm0, %v1630_v3 }
  0xc8   : > { %1510 = vmatmul.mubr.msk.bf16.vlgmr.msra.gmra.mrb[28].mxu0 %vm267_vm3, %v1508_v50 }
  0xc9   : > { %1247 = vmatpush1.bf16.msra.mxu0 %v1238_v53  ;;  %1278 = vmatprep.mubr.bf16.mxu0 %v1632_v6 }
  0xcd   : > { %1587 = vmatmul.mubr.msk.bf16.vlgmr.msra.gmra.mrb[32].mxu1 %vm267_vm3, %v1512_v54 }
  0xd0   : > { %1514 = vmatmul.mubr.msk.bf16.vlgmr.msra.gmra.mrb[32].mxu0 %vm267_vm3, %v1512_v54 }
 0x160   : > { %v356_v55 = vpop.f32.mrb[0].mxu1 }
 0x161   : > { %v1540_v56 = vpop.f32.mrb[1].mxu1 }
 0x162   : > { %v359_v57 = vpop.f32.mrb[2].mxu1 }
 0x163   : > { %v315_v58 = vpop.f32.mrb[0].mxu0  ;;  %v1541_v59 = vpop.f32.mrb[3].mxu1 }
 0x164   : > { %v317_v60 = vpop.f32.mrb[1].mxu0 }
 0x165   : > { %v319_v3 = vpop.f32.mrb[2].mxu0 }
 0x166   : > { %v320_v61 = vpop.f32.mrb[3].mxu0 }
 0x168   : > { %v449_v62 = vpop.f32.mrb[4].mxu1 }
 0x169   : > { %v450_v63 = vadd.f32 %v449_v62, %v356_v55  ;;  %v1546_v0 = vpop.f32.mrb[5].mxu1 }
 0x16a   : > { %v452_v6 = vpop.f32.mrb[6].mxu1 }
 0x16b   : > { %v408_v1 = vpop.f32.mrb[4].mxu0  ;;  %v1547_v2 = vpop.f32.mrb[7].mxu1 }
 0x16c   : > { %v409_v5 = vadd.f32 %v408_v1, %v315_v58  ;;  %v410_v7 = vpop.f32.mrb[5].mxu0 }
 0x16d   : > { %v411_v8 = vadd.f32 %v410_v7, %v317_v60  ;;  %v412_v9 = vpop.f32.mrb[6].mxu0 }
 0x16e   : > { %v413_v10 = vpop.f32.mrb[7].mxu0 }
 0x170   : > { %v571_v11 = vpop.f32.mrb[8].mxu1 }
 0x171   : > { %v579_v12 = vadd.f32 %v571_v11, %v450_v63  ;;  %v1552_v13 = vpop.f32.mrb[9].mxu1 }
 0x172   : > { %v574_v14 = vpop.f32.mrb[10].mxu1 }
 0x173   : > { %v530_v15 = vpop.f32.mrb[8].mxu0  ;;  %v1553_v16 = vpop.f32.mrb[11].mxu1 }
 0x174   : > { %v577_v17 = vadd.f32 %v530_v15, %v409_v5  ;;  %v532_v18 = vpop.f32.mrb[9].mxu0  ;;  %v1334_v15 = vpop.permute.xlu0 %1333  ;;  %v1347_v16 = vsub.s32 0, %v1682_v4 }
 0x175   : > { %v578_v19 = vadd.f32 %v532_v18, %v411_v8  ;;  %v534_v20 = vpop.f32.mrb[10].mxu0 }
 0x176   : > { %v535_v21 = vpop.f32.mrb[11].mxu0  ;;  %v1343_v20 = vld [vmem:[%s1867_s3] sm:$0x7] }
 0x177   : > { %v1351_v21 = vsub.s32 1, %v1682_v4 }
 0x178   : > { %v696_v22 = vpop.f32.mrb[12].mxu1 }
 0x179   : > { %v704_v23 = vadd.f32 %v696_v22, %v579_v12  ;;  %v1558_v24 = vpop.f32.mrb[13].mxu1 }
 0x17a   : > { %v699_v25 = vpop.f32.mrb[14].mxu1 }
 0x17b   : > { %v655_v26 = vpop.f32.mrb[12].mxu0  ;;  %v1559_v27 = vpop.f32.mrb[15].mxu1 }
 0x17c   : > { %v702_v28 = vadd.f32 %v655_v26, %v577_v17  ;;  %v657_v29 = vpop.f32.mrb[13].mxu0  ;;  %v1355_v17 = vsub.s32 2, %v1682_v4 }
 0x17d   : > { %v703_v30 = vadd.f32 %v657_v29, %v578_v19  ;;  %v659_v31 = vpop.f32.mrb[14].mxu0 }
 0x17e   : > { %v660_v32 = vpop.f32.mrb[15].mxu0  ;;  %v1356_v29 = vrot.slane %v1343_v20, %v1355_v17 }
 0x17f   : > { %v1352_v32 = vrot.slane %v1343_v20, %v1351_v21 }
 0x180   : > { %v821_v33 = vpop.f32.mrb[16].mxu1 }
 0x181   : > { %v829_v34 = vadd.f32 %v821_v33, %v704_v23  ;;  %v1564_v35 = vpop.f32.mrb[17].mxu1 }
 0x182   : > { %v824_v36 = vpop.f32.mrb[18].mxu1 }
 0x183   : > { %v780_v37 = vpop.f32.mrb[16].mxu0  ;;  %v1565_v38 = vpop.f32.mrb[19].mxu1 }
 0x184   : > { %v827_v39 = vadd.f32 %v780_v37, %v702_v28  ;;  %v782_v40 = vpop.f32.mrb[17].mxu0  ;;  %v1348_v28 = vrot.slane %v1343_v20, %v1347_v16 }
 0x185   : > { %v828_v41 = vadd.f32 %v782_v40, %v703_v30  ;;  %v784_v42 = vpop.f32.mrb[18].mxu0 }
 0x186   : > { %v785_v43 = vpop.f32.mrb[19].mxu0 }
 0x188   : > { %v946_v44 = vpop.f32.mrb[20].mxu1 }
 0x189   : > { %v954_v45 = vadd.f32 %v946_v44, %v829_v34  ;;  %v1570_v46 = vpop.f32.mrb[21].mxu1 }
 0x18a   : > { %v949_v47 = vpop.f32.mrb[22].mxu1 }
 0x18b   : > { %v905_v48 = vpop.f32.mrb[20].mxu0  ;;  %v1571_v49 = vpop.f32.mrb[23].mxu1 }
 0x18c   : > { %v952_v50 = vadd.f32 %v905_v48, %v827_v39  ;;  %v907_v51 = vpop.f32.mrb[21].mxu0 }
 0x18d   : > { %v953_v52 = vadd.f32 %v907_v51, %v828_v41  ;;  %v909_v53 = vpop.f32.mrb[22].mxu0 }
 0x18e   : > { %v910_v54 = vpop.f32.mrb[23].mxu0 }
 0x190   : > { %v1071_v55 = vpop.f32.mrb[24].mxu1 }
 0x191   : > { %v1079_v56 = vadd.f32 %v1071_v55, %v954_v45  ;;  %v1576_v57 = vpop.f32.mrb[25].mxu1 }
 0x192   : > { %v1074_v58 = vpop.f32.mrb[26].mxu1 }
 0x193   : > { %v1030_v59 = vpop.f32.mrb[24].mxu0  ;;  %v1577_v60 = vpop.f32.mrb[27].mxu1 }
 0x194   : > { %v1077_v3 = vadd.f32 %v1030_v59, %v952_v50  ;;  %v1032_v61 = vpop.f32.mrb[25].mxu0 }
 0x195   : > { %v1078_v62 = vadd.f32 %v1032_v61, %v953_v52  ;;  %v1034_v63 = vpop.f32.mrb[26].mxu0 }
 0x196   : > { %v1035_v0 = vpop.f32.mrb[27].mxu0 }
 0x198   : > { %v1196_v6 = vpop.f32.mrb[28].mxu1 }
 0x199   : > { %v1204_v1 = vadd.f32 %v1196_v6, %v1079_v56  ;;  %v1582_v2 = vpop.f32.mrb[29].mxu1 }
 0x19a   : > { %v1199_v5 = vpop.f32.mrb[30].mxu1 }
 0x19b   : > { %v1155_v7 = vpop.f32.mrb[28].mxu0  ;;  %v1583_v8 = vpop.f32.mrb[31].mxu1 }
 0x19c   : > { %v1202_v9 = vadd.f32 %v1155_v7, %v1077_v3  ;;  %v1157_v10 = vpop.f32.mrb[29].mxu0 }
 0x19d   : > { %v1203_v11 = vadd.f32 %v1157_v10, %v1078_v62  ;;  %v1159_v12 = vpop.f32.mrb[30].mxu0 }
 0x19e   : > { %v1160_v13 = vpop.f32.mrb[31].mxu0 }
 0x1a0   : > { %v1321_v14 = vpop.f32.mrb[32].mxu1 }
 0x1a1   : > { %v1329_v18 = vadd.f32 %v1321_v14, %v1204_v1  ;;  %v1588_v19 = vpop.f32.mrb[33].mxu1 }
 0x1a2   : > { %v1324_v22 = vpop.f32.mrb[34].mxu1 }
 0x1a3   : > { %v1338_v23 = vadd.f32 %v1334_v15, %v1329_v18  ;;  %v1280_v24 = vpop.f32.mrb[32].mxu0  ;;  %v1589_v25 = vpop.f32.mrb[35].mxu1 }
 0x1a4   : > { %v1327_v26 = vadd.f32 %v1280_v24, %v1202_v9  ;;  %v1282_v27 = vpop.f32.mrb[33].mxu0 }
 0x1a5   : > { %v1328_v30 = vadd.f32 %v1282_v27, %v1203_v11  ;;  %v1284_v31 = vpop.f32.mrb[34].mxu0  ;;  %1342 = vst.msk [vmem:[%s231_s9 + $0x10] sm:$0xff] %vm1341_vm11, %v1338_v23  ;;  %v1362_v36 = vmul.f32 %v1356_v29, %v1338_v23 }
 0x1a6   : > { %v1336_v4 = vadd.f32 %v1334_v15, %v1327_v26  ;;  %v1285_v33 = vpop.f32.mrb[35].mxu0 }
 0x1a7   : > { %v1337_v34 = vadd.f32 %v1334_v15, %v1328_v30  ;;  %v1364_v39 = vsel %vm1341_vm11, %v1362_v36, 0.0 }
 0x1a8   : > { %1339 = vst [vmem:[%s231_s9] sm:$0xff] %v1336_v4  ;;  %v1360_v35 = vmul.f32 %v1348_v28, %v1336_v4 }
 0x1a9   : > { %1340 = vst [vmem:[%s231_s9 + $0x8] sm:$0xff] %v1337_v34  ;;  %v1361_v37 = vmul.f32 %v1352_v32, %v1337_v34 }
 0x1ab   : > { %v1363_v38 = vadd.f32 %v1361_v37, %v1360_v35 }
 0x1ad   : > { %v1365_v40 = vadd.f32 %v1364_v39, %v1363_v38 }
 0x1af   : > { %1366 = vadd.xlane.f32.xlu1 %v1365_v40 }
 0x23c   : > { %v1367_v41 = vpop.xlane.xlu1 %1366 }
 0x23d   : > { %v1368_v42 = vmul.f32 0.00390625, %v1367_v41 }
 0x23f   : > { %v1369_v43 = vsub.f32 %v1336_v4, %v1368_v42  ;;  %v1370_v44 = vsub.f32 %v1337_v34, %v1368_v42  ;;  %v1371_v45 = vsub.f32 %v1338_v23, %v1368_v42  ;;  %1384 = vst.msk [vmem:[%s235_s13] sm:$0xff] %vm1383_vm12, %v1368_v42 }
 0x241   : > { %v1372_v46 = vmul.f32 %v1369_v43, %v1369_v43  ;;  %v1373_v47 = vmul.f32 %v1370_v44, %v1370_v44  ;;  %v1374_v48 = vmul.f32 %v1371_v45, %v1371_v45 }
 0x243   : > { %v1375_v49 = vmul.f32 %v1372_v46, %v1348_v28  ;;  %v1376_v50 = vmul.f32 %v1373_v47, %v1352_v32  ;;  %v1377_v51 = vmul.f32 %v1374_v48, %v1356_v29 }
 0x245   : > { %v1378_v52 = vadd.f32 %v1376_v50, %v1375_v49  ;;  %v1379_v53 = vsel %vm1341_vm11, %v1377_v51, 0.0 }
 0x247   : > { %v1380_v54 = vadd.f32 %v1379_v53, %v1378_v52 }
 0x249   : > { %1381 = vadd.xlane.f32.xlu0 %v1380_v54 }
 0x2d6   : > { %v1382_v55 = vpop.xlane.xlu0 %1381 }
 0x2d7   : > { %1386 = vst.msk [vmem:[%s235_s13] sm:$0xff] %vm1385_vm13, %v1382_v55 }
 0x2d8 PF: > { %s16_s18 = sadd.s32 1, %s1627_s18  }
 0x2d9   : > { %p13_p4 = scmp.ge.s32.totalorder %s16_s18, 4  }
 0x2db   :  { %15 = sbr.rel (!%p13_p4) target bundleno = 1 (0x1), region = 86 }

</bundles_post_ra>
